<compile_context>
chip_gen: v5e
topology: v5e:2x2
jax: 0.10.0
libtpu: 0.0.40
codegen_flags: <defaults>
</compile_context>

<pallas_src>
import jax
import jax.numpy as jnp
from jax.experimental import pallas as pl
from jax.experimental.pallas import tpu as pltpu


def hcoatt_encoder(images_nchw, params, k_top_tags=10, tile_hw=None):
    B, Cin, H, W = images_nchw.shape
    HW = H * W

    wf = params["w_feat"].astype(jnp.bfloat16)   # (Cf, Cin)  conv1x1 stand-in, (out, in) layout
    bf = params["b_feat"].astype(jnp.float32)    # (Cf, 1)
    wc = params["w_cls"].astype(jnp.float32)     # (Cf, n_tags)
    bc = params["b_cls"].astype(jnp.float32)     # (1, n_tags)
    emb = params["tag_embedding"]                # (n_tags, E)
    Cf = wf.shape[0]

    # Channels -> sublanes, HW -> lanes: this is a *free* reshape of NCHW (no HBM transpose).
    x = images_nchw.reshape(B, Cin, HW).astype(jnp.float32)

    # HW tile: lane-dense (multiple of 128), bounded so double-buffered in/out tiles stay well
    # under the 32 MiB scoped / 64 MiB physical VMEM of v7x even at Cf=1024.
    if tile_hw is None:
        for cand in (2048, 1024, 512, 256, 128):
            if HW % cand == 0:
                tile_hw = cand
                break
        else:
            tile_hw = HW
    n_hw_tiles = HW // tile_hw
    inv_hw = 1.0 / float(HW)

    def _encoder_kernel(x_ref, wf_ref, bf_ref, lf_ref, pooled_ref):
        hw_i = pl.program_id(1)

        # Pooled accumulator lives in the (resident) output block across the HW axis.
        @pl.when(hw_i == 0)
        def _():
            pooled_ref[...] = jnp.zeros_like(pooled_ref)

        # TODO(synk): densenet-121 backbone replaced by a deterministic 1x1-conv stand-in
        # (pointwise projection Cin -> Cf); no pretrained checkpoint can be loaded in-script.
        x_blk = x_ref[0].astype(jnp.bfloat16)                       # (Cin, tile_hw)
        w = wf_ref[...]                                             # (Cf, Cin) bf16
        feat = jnp.dot(w, x_blk, preferred_element_type=jnp.float32) + bf_ref[...]
        feat = jnp.maximum(feat, 0.0)                               # F.relu(local_features), f32
        lf_ref[0] = feat.astype(lf_ref.dtype)                       # bf16 store, lane-dense (tile_hw)

        # Spatial-sum accumulation in f32 (adaptive avg pool numerator).
        pooled_ref[0] = pooled_ref[0] + jnp.sum(feat, axis=1, keepdims=True)   # (Cf, 1)

        @pl.when(hw_i == pl.num_programs(1) - 1)
        def _():
            pooled_ref[0] = pooled_ref[0] * inv_hw                  # finalize mean

        return

    local_flat, pooled = pl.pallas_call(
        _encoder_kernel,
        out_shape=(
            jax.ShapeDtypeStruct((B, Cf, HW), jnp.bfloat16),        # local features (bf16 writeback)
            jax.ShapeDtypeStruct((B, Cf, 1), jnp.float32),          # pooled (global) features
        ),
        grid_spec=pltpu.PrefetchScalarGridSpec(
            num_scalar_prefetch=0,
            grid=(B, n_hw_tiles),
            in_specs=[
                pl.BlockSpec((1, Cin, tile_hw), lambda b, h: (b, 0, h)),  # image tile (chan x HW)
                pl.BlockSpec((Cf, Cin), lambda b, h: (0, 0)),             # conv1x1 weight (resident)
                pl.BlockSpec((Cf, 1), lambda b, h: (0, 0)),               # bias (resident)
            ],
            out_specs=[
                pl.BlockSpec((1, Cf, tile_hw), lambda b, h: (b, 0, h)),   # local features tile
                pl.BlockSpec((1, Cf, 1), lambda b, h: (b, 0, 0)),         # pooled accumulator
            ],
        ),
        compiler_params=pltpu.CompilerParams(
            dimension_semantics=("parallel", "arbitrary"),   # B across cores, HW is the reduction
            vmem_limit_bytes=64 << 20,
        ),
    )(x, wf, bf)

    # Already NCHW layout — free reshape, no transpose pass.
    local_features = local_flat.reshape(B, Cf, H, W)
    global_features = pooled.reshape(B, Cf)

    # Classifier: tiny batched GEMM outside the kernel (avoids 16-wide masked stores per step).
    tags = jnp.dot(global_features, wc, preferred_element_type=jnp.float32) + bc   # (B, n_tags)

    # torch.topk + nn.Embedding(top_idx): plain-JAX glue (no useful Pallas hot path).
    _, top_idx = jax.lax.top_k(tags, k_top_tags)                    # (B, k)
    tags_embeddings = jnp.take(emb, top_idx, axis=0)                # (B, k, E)

    return local_features, tags, tags_embeddings


def init_params(key, c_in, features_size, n_tags, embedding_size):
    k0, k1, k2, k3 = jax.random.split(key, 4)
    scale_f = 1.0 / jnp.sqrt(jnp.float32(c_in))
    scale_c = 1.0 / jnp.sqrt(jnp.float32(features_size))
    return {
        "w_feat": jax.random.normal(k0, (features_size, c_in), jnp.float32) * scale_f,  # (out, in)
        "b_feat": jnp.zeros((features_size, 1), jnp.float32),
        "w_cls": jax.random.normal(k1, (features_size, n_tags), jnp.float32) * scale_c,
        "b_cls": jax.random.uniform(k2, (1, n_tags), jnp.float32, -scale_c, scale_c),
        "tag_embedding": jax.random.normal(k3, (n_tags, embedding_size), jnp.float32),
    }


def _reference(images_nchw, params):
    B, Cin, H, W = images_nchw.shape
    x = images_nchw.reshape(B, Cin, H * W).astype(jnp.float32)
    feat = jnp.einsum("fc,bcs->bfs", params["w_feat"], x) + params["b_feat"][None]
    feat = jnp.maximum(feat, 0.0)
    pooled = jnp.mean(feat, axis=2)
    tags = pooled @ params["w_cls"] + params["b_cls"]
    return feat.reshape(B, -1, H, W), tags


if __name__ == "__main__":
    # Small, module-consistent shapes:
    B, C_IN, H, W = 2, 4, 16, 16          # images (NCHW like PyTorch)
    FEATURES_SIZE = 128                   # backbone feature channels (densenet-121 would be 1024)
    N_TAGS = 16                           # n_tags (>= k_top_tags)
    EMBED = 32                            # embedding_size
    K_TOP = 10                            # k_top_tags

    key = jax.random.PRNGKey(0)
    k_img, k_par = jax.random.split(key)
    images = jax.random.normal(k_img, (B, C_IN, H, W), jnp.float32)
    params = init_params(k_par, C_IN, FEATURES_SIZE, N_TAGS, EMBED)

    local_features, tags, tags_embeddings = hcoatt_encoder(images, params, k_top_tags=K_TOP)
    jax.block_until_ready((local_features, tags, tags_embeddings))

    assert local_features.shape == (B, FEATURES_SIZE, H, W)
    assert tags.shape == (B, N_TAGS)
    assert tags_embeddings.shape == (B, K_TOP, EMBED)

    # Loose numerical sanity check vs pure-JAX f32 reference (kernel computes in bf16).
    ref_local, ref_tags = _reference(images, params)
    assert jnp.allclose(local_features.astype(jnp.float32), ref_local, atol=5e-2, rtol=5e-2)
    assert jnp.allclose(tags, ref_tags, atol=5e-2, rtol=5e-2)

    print("KERNEL_OK")
</pallas_src>

<mosaic_0001>
module attributes {stable_mosaic.version = 11 : i64} {
  func.func @_encoder_kernel(%arg0: i32, %arg1: i32, %arg2: memref<1x4x256xf32, #tpu.memory_space<vmem>>, %arg3: memref<128x4xbf16, #tpu.memory_space<vmem>>, %arg4: memref<128x1xf32, #tpu.memory_space<vmem>>, %arg5: memref<1x128x256xbf16, #tpu.memory_space<vmem>>, %arg6: memref<1x128x1xf32, #tpu.memory_space<vmem>>) attributes {dimension_semantics = [#tpu.dimension_semantics<parallel>, #tpu.dimension_semantics<arbitrary>], iteration_bounds = array<i64: 2, 1>, scalar_prefetch = 0 : i64, scratch_operands = 0 : i64, tpu.core_type = #tpu.core_type<tc>, window_params = [{transform_indices = @transform_0, window_bounds = array<i64: 1, 4, 256>}, {pipeline_mode = #tpu.pipeline_mode<synchronous>, transform_indices = @transform_1, window_bounds = array<i64: 128, 4>}, {pipeline_mode = #tpu.pipeline_mode<synchronous>, transform_indices = @transform_2, window_bounds = array<i64: 128, 1>}, {transform_indices = @transform_3, window_bounds = array<i64: 1, 128, 256>}, {transform_indices = @transform_4, window_bounds = array<i64: 1, 128, 1>}]} {
    %c0_i32 = arith.constant 0 : i32
    %0 = arith.cmpi eq, %arg1, %c0_i32 : i32
    %1 = arith.extui %0 : i1 to i32
    %c0_i32_0 = arith.constant 0 : i32
    %2 = arith.cmpi ne, %1, %c0_i32_0 : i32
    scf.if %2 {
      %cst_20 = arith.constant 0.000000e+00 : f32
      %28 = vector.broadcast %cst_20 : f32 to vector<1x128x1xf32>
      %c0_21 = arith.constant 0 : index
      %c0_22 = arith.constant 0 : index
      %c0_23 = arith.constant 0 : index
      %29 = vector.load %arg6[%c0_21, %c0_22, %c0_23] : memref<1x128x1xf32, #tpu.memory_space<vmem>>, vector<1x128x1xf32>
      tpu.vector_store %arg6[%c0_21, %c0_22, %c0_23], %28 {strides = array<i32>} : memref<1x128x1xf32, #tpu.memory_space<vmem>>, vector<1x128x1xf32>,
    } else {
    }
    %c0 = arith.constant 0 : index
    %c0_1 = arith.constant 0 : index
    %c0_2 = arith.constant 0 : index
    %3 = vector.load %arg2[%c0, %c0_1, %c0_2] : memref<1x4x256xf32, #tpu.memory_space<vmem>>, vector<1x4x256xf32>
    %4 = vector.shape_cast %3 : vector<1x4x256xf32> to vector<4x256xf32>
    %5 = arith.truncf %4 : vector<4x256xf32> to vector<4x256xbf16>
    %c0_3 = arith.constant 0 : index
    %c0_4 = arith.constant 0 : index
    %6 = vector.load %arg3[%c0_3, %c0_4] : memref<128x4xbf16, #tpu.memory_space<vmem>>, vector<128x4xbf16>
    %cst = arith.constant dense<0.000000e+00> : vector<128x256xf32>
    %7 = tpu.matmul %6, %5, %cst {dimension_numbers = #tpu.dot_dimension_numbers<[1], [0], [0], [1], [0, 0, 1, 1], [], []>} : vector<128x4xbf16>, vector<4x256xbf16>, vector<128x256xf32> -> vector<128x256xf32>
    %c0_5 = arith.constant 0 : index
    %c0_6 = arith.constant 0 : index
    %8 = vector.load %arg4[%c0_5, %c0_6] : memref<128x1xf32, #tpu.memory_space<vmem>>, vector<128x1xf32>
    %9 = vector.broadcast %8 : vector<128x1xf32> to vector<128x256xf32>
    %10 = arith.addf %7, %9 : vector<128x256xf32>
    %cst_7 = arith.constant 0.000000e+00 : f32
    %11 = vector.broadcast %cst_7 : f32 to vector<128x256xf32>
    %12 = arith.maximumf %10, %11 : vector<128x256xf32>
    %13 = arith.truncf %12 : vector<128x256xf32> to vector<128x256xbf16>
    %c0_8 = arith.constant 0 : index
    %c0_9 = arith.constant 0 : index
    %c0_10 = arith.constant 0 : index
    %14 = vector.load %arg5[%c0_8, %c0_9, %c0_10] : memref<1x128x256xbf16, #tpu.memory_space<vmem>>, vector<1x128x256xbf16>
    %15 = vector.shape_cast %14 : vector<1x128x256xbf16> to vector<128x256xbf16>
    %16 = vector.shape_cast %13 : vector<128x256xbf16> to vector<1x128x256xbf16>
    tpu.vector_store %arg5[%c0_8, %c0_9, %c0_10], %16 {strides = array<i32>} : memref<1x128x256xbf16, #tpu.memory_space<vmem>>, vector<1x128x256xbf16>,
    %c0_11 = arith.constant 0 : index
    %c0_12 = arith.constant 0 : index
    %c0_13 = arith.constant 0 : index
    %17 = vector.load %arg6[%c0_11, %c0_12, %c0_13] : memref<1x128x1xf32, #tpu.memory_space<vmem>>, vector<1x128x1xf32>
    %18 = vector.shape_cast %17 : vector<1x128x1xf32> to vector<128x1xf32>
    %cst_14 = arith.constant dense<0.000000e+00> : vector<128xf32>
    %19 = vector.multi_reduction <add>, %12, %cst_14 [1] : vector<128x256xf32> to vector<128xf32>
    %20 = vector.shape_cast %19 : vector<128xf32> to vector<128x1xf32>
    %21 = arith.addf %18, %20 : vector<128x1xf32>
    %c0_15 = arith.constant 0 : index
    %c0_16 = arith.constant 0 : index
    %c0_17 = arith.constant 0 : index
    %22 = vector.load %arg6[%c0_15, %c0_16, %c0_17] : memref<1x128x1xf32, #tpu.memory_space<vmem>>, vector<1x128x1xf32>
    %23 = vector.shape_cast %22 : vector<1x128x1xf32> to vector<128x1xf32>
    %24 = vector.shape_cast %21 : vector<128x1xf32> to vector<1x128x1xf32>
    tpu.vector_store %arg6[%c0_15, %c0_16, %c0_17], %24 {strides = array<i32>} : memref<1x128x1xf32, #tpu.memory_space<vmem>>, vector<1x128x1xf32>,
    %c0_i32_18 = arith.constant 0 : i32
    %25 = arith.cmpi eq, %arg1, %c0_i32_18 : i32
    %26 = arith.extui %25 : i1 to i32
    %c0_i32_19 = arith.constant 0 : i32
    %27 = arith.cmpi ne, %26, %c0_i32_19 : i32
    scf.if %27 {
      %c0_20 = arith.constant 0 : index
      %c0_21 = arith.constant 0 : index
      %c0_22 = arith.constant 0 : index
      %28 = vector.load %arg6[%c0_20, %c0_21, %c0_22] : memref<1x128x1xf32, #tpu.memory_space<vmem>>, vector<1x128x1xf32>
      %29 = vector.shape_cast %28 : vector<1x128x1xf32> to vector<128x1xf32>
      %cst_23 = arith.constant 3.906250e-03 : f32
      %30 = vector.broadcast %cst_23 : f32 to vector<128x1xf32>
      %31 = arith.mulf %29, %30 : vector<128x1xf32>
      %c0_24 = arith.constant 0 : index
      %c0_25 = arith.constant 0 : index
      %c0_26 = arith.constant 0 : index
      %32 = vector.load %arg6[%c0_24, %c0_25, %c0_26] : memref<1x128x1xf32, #tpu.memory_space<vmem>>, vector<1x128x1xf32>
      %33 = vector.shape_cast %32 : vector<1x128x1xf32> to vector<128x1xf32>
      %34 = vector.shape_cast %31 : vector<128x1xf32> to vector<1x128x1xf32>
      tpu.vector_store %arg6[%c0_24, %c0_25, %c0_26], %34 {strides = array<i32>} : memref<1x128x1xf32, #tpu.memory_space<vmem>>, vector<1x128x1xf32>,
    } else {
    }
    return
  }
  func.func @transform_0(%arg0: i32, %arg1: i32) -> (i32, i32, i32) {
    %c0_i32 = arith.constant 0 : i32
    %c0_i32_0 = arith.constant 0 : i32
    return %arg0, %c0_i32, %arg1 : i32, i32, i32
  }
  func.func @transform_1(%arg0: i32, %arg1: i32) -> (i32, i32) {
    %c0_i32 = arith.constant 0 : i32
    %c0_i32_0 = arith.constant 0 : i32
    %c0_i32_1 = arith.constant 0 : i32
    return %c0_i32, %c0_i32_0 : i32, i32
  }
  func.func @transform_2(%arg0: i32, %arg1: i32) -> (i32, i32) {
    %c0_i32 = arith.constant 0 : i32
    %c0_i32_0 = arith.constant 0 : i32
    %c0_i32_1 = arith.constant 0 : i32
    return %c0_i32, %c0_i32_0 : i32, i32
  }
  func.func @transform_3(%arg0: i32, %arg1: i32) -> (i32, i32, i32) {
    %c0_i32 = arith.constant 0 : i32
    %c0_i32_0 = arith.constant 0 : i32
    return %arg0, %c0_i32, %arg1 : i32, i32, i32
  }
  func.func @transform_4(%arg0: i32, %arg1: i32) -> (i32, i32, i32) {
    %c0_i32 = arith.constant 0 : i32
    %c0_i32_0 = arith.constant 0 : i32
    %c0_i32_1 = arith.constant 0 : i32
    return %arg0, %c0_i32, %c0_i32_0 : i32, i32, i32
  }
}

</mosaic_0001>

<bundles_post_ra>
// kernel: tpu_custom_call.1
= control target key start
LH: loop header
LB: loop body
LE: loop exit
PB: predicated region body
PF: predicated region fallthrough
CT: control target
= control target key end

     0   :  { %10 = vsyncpa [#allocation3], 0  ;;  %s1503_s0 = inlined_call_operand.vmem [shape: f32[2,4,256], index: 0, kind: input, shape index: {}]   ;;  %s1504_s1 = inlined_call_operand.vmem [shape: bf16[128,4], index: 1, kind: input, shape index: {}]   ;;  %s1505_s2 = inlined_call_operand.vmem [shape: f32[128,1], index: 2, kind: input, shape index: {}]   ;;  %s1506_s3 = inlined_call_operand.hbm [shape: bf16[2,128,256], index: 3, kind: output, shape index: {0}]   ;;  %s1507_s4 = inlined_call_operand.vmem [shape: f32[2,128,1], index: 4, kind: output, shape index: {1}]  }
   0x1   :  { %12 = vsyncpa [#allocation3 + $0x1], 0  ;;  %s1142_s15 = smov 0   ;;  %s1144_s16 = smov 0  }
   0x2   :  { %s1146_s17 = smov 0   ;;  %s1148_s18 = smov 0  }
   0x3   :  { %s1150_s19 = smov 0   ;;  %s1152_s20 = smov 0  }
   0x4 LB: > { %s895_s21 = sadd.s32 4294967295, %s1111_s20   ;;  %s896_s22 = sadd.s32 4294967294, %s1111_s20   ;;  %s1111_s20 = sphi %s1152_s20, %s18_s20   ;;  %s1107_s19 = sphi %s1150_s19, %s1514_s19   ;;  %s1103_s18 = sphi %s1148_s18, %s1513_s18   ;;  %s1099_s17 = sphi %s1146_s17, %s1512_s17   ;;  %s1095_s16 = sphi %s1144_s16, %s1511_s16   ;;  %s1091_s15 = sphi %s1142_s15, %s1510_s15  }
   0x5   : > { %s30_s23 = sadd.s32 1, %s1107_s19  ;;  %s109_s24 = sadd.s32 1, %s1099_s17 }
   0x6   : > { %p32_p0 = scmp.ge.s32.totalorder %s30_s23, 2  ;;  %p119_p1 = scmp.ne.s32.totalorder %s1099_s17, %s1095_s16 }
   0x7   : > { %p120_p2 = scmp.eq.s32.totalorder %s895_s21, 1  ;;  %p125_p3 = scmp.ne.s32.totalorder %s1095_s16, %s1091_s15 }
   0x8   : > { %s1516_s23 = smov (%p32_p0, %s30_s23), 0  ;;  %p126_p5 = scmp.eq.s32.totalorder %s896_s22, 1 }
   0x9   : > { %p1182_p4 = por %p120_p2, %p119_p1  ;;  %s104_s26 = ssub.s32 %s1107_s19, %s1516_s23 }
   0xa   : > { %p899_p6 = scmp.ge.s32.totalorder %s1111_s20, 1  ;;  %p107_p7 = scmp.eq.s32.totalorder %s104_s26, 0 }
   0xb   : > { %p1189_p8 = por %p126_p5, %p125_p3  ;;  %p189_p9 = scmp.lt.s32.totalorder %s1111_s20, 3 }
   0xc   : > { %s1195_s28 = scalar_select %p107_p7, %s1099_s17, %s109_s24  }
   0xd   : > { %p190_p10 = pnand %p899_p6, %p189_p9 }
   0xe   : > { %p225_p11 = scmp.lt.s32.totalorder (!%p190_p10), %s1103_s18, 1  ;;  %s214_s11 = sand.u32 (!%p190_p10), 1, %s1095_s16  }
   0xf   : > { %193 = sbr.rel (%p190_p10) target bundleno = 365 (0x16d), region = 32  ;;  %s900_s12 = sshll.u32 (!%p190_p10), %s214_s11, 7 }
  0x10   : > { %s766_s8 = scalar_lea.sflag (!%p190_p10), [#allocation3], %s214_s11 }
  0x14   : > { %v287_v0 = vld [vmem:[%s1505_s2] sm:$0xff]  ;;  %v289_v1 = vld [vmem:[%s1505_s2 + $0x10] sm:$0xff]  ;;  %v1113_v2 = vmov 0   ;;  %s1205_s7 = scalar_select %p225_p11, %s1103_s18, 1  ;;  %v288_v5 = vld [vmem:[%s1505_s2 + $0x8] sm:$0xff]  ;;  %vm448_vm0 = vcmask 1041408  }
  0x15   : > { %1030 = vset.pattern.permute.xlu0 %v1113_v2  ;;  %1031 = vset.pattern.permute.xlu1 %v1113_v2  ;;  %v291_v3 = vld [vmem:[%s1505_s2 + $0x20] sm:$0xff]  ;;  %v290_v6 = vld [vmem:[%s1505_s2 + $0x18] sm:$0xff]  ;;  %v292_v7 = vld [vmem:[%s1505_s2 + $0x28] sm:$0xff]  ;;  %vm423_vm1 = vcmask 31744   ;;  %vm245_vm2 = vcmask 7168  }
  0x16   : > { %305 = vperm.xlu0 %1030, %v287_v0   ;;  %315 = vperm.xlu1 %1031, %v289_v1   ;;  %s958_s10 = sshll.u32 %s1205_s7, 3  ;;  %v293_v10 = vld [vmem:[%s1505_s2 + $0x30] sm:$0xff]  ;;  %v960_v15 = vld [vmem:[%s1504_s1] sm:$0xff]  ;;  %v294_v16 = vld [vmem:[%s1505_s2 + $0x38] sm:$0xff]  ;;  %s959_s14 = sshll.u32 %s1205_s7, 7 }
  0x17   : > { %1032 = vset.pattern.permute.xlu2 %v1113_v2  ;;  %s232_s13 = scalar_lea.vmem %s1503_s0, %s958_s10  ;;  %v964_v17 = vld [vmem:[%s1504_s1 + $0x20] sm:$0xff]  ;;  %v296_v19 = vld [vmem:[%s1505_s2 + $0x48] sm:$0xff]  ;;  %v297_v20 = vld [vmem:[%s1505_s2 + $0x50] sm:$0xff]  ;;  %s1319_s24 = scalar_lea.vmem %s1507_s4, %s959_s14 }
  0x18   : > { %325 = vperm.xlu2 %1032, %v291_v3   ;;  %v262_v4 = vld [vmem:[%s232_s13] sm:$0xff]  ;;  %v298_v21 = vld [vmem:[%s1505_s2 + $0x58] sm:$0xff]  ;;  %v961_v23 = vld [vmem:[%s1504_s1 + $0x8] sm:$0xff]  ;;  %s1302_s13 = scalar_lea.vmem [#allocation2], %s900_s12  ;;  %s968_s7 = sshll.u32 %s1103_s18, 7 }
  0x19   : > { %264 = vst [vmem:[#allocation1] ss:$2 sm:$0xff] %v262_v4  ;;  %v295_v18 = vld [vmem:[%s1505_s2 + $0x40] sm:$0xff]  ;;  %v300_v24 = vld [vmem:[%s1505_s2 + $0x68] sm:$0xff]  ;;  %v301_v26 = vld [vmem:[%s1505_s2 + $0x70] sm:$0xff]  ;;  %s784_s30 = scalar_lea.hbm %s1506_s3, %s968_s7  ;;  %s785_s5 = sshll.u32 %s1302_s13, 4  ;;  %s786_s5 = int_to_ptr.vmem [resolvable:$true] %s785_s5 }
  0x1a   : > { %v299_v22 = vld [vmem:[%s1505_s2 + $0x60] sm:$0xff]  ;;  %v965_v25 = vld [vmem:[%s1504_s1 + $0x28] sm:$0xff]  ;;  %v302_v27 = vld [vmem:[%s1505_s2 + $0x78] sm:$0xff]  ;;  %s787_s6 = sshll.u32 %s784_s30, 4  ;;  %s1053_s14 = scalar_lea.hbm %s1506_s3, 256  ;;  %s788_s6 = int_to_ptr.hbm [resolvable:$true] %s787_s6 }
  0x1b   : > { %v962_v28 = vld [vmem:[%s1504_s1 + $0x10] sm:$0xff]  ;;  %v963_v30 = vld [vmem:[%s1504_s1 + $0x18] sm:$0xff]  ;;  %s1047_s9 = sshra.s32 %s788_s6, 4  ;;  %s1048_s9 = int_to_ptr.hbm [resolvable:$true] %s1047_s9 }
  0x1c   : > { %v966_v29 = vld [vmem:[%s1504_s1 + $0x30] sm:$0xff]  ;;  %v967_v31 = vld [vmem:[%s1504_s1 + $0x38] sm:$0xff]  ;;  %s1049_s10 = scalar_lea.hbm %s1048_s9, 128  ;;  %p1054_p1 = scmp.lt.s32.totalorder %s1048_s9, %s1506_s3 }
  0x1d   : > { %p1050_p12 = scmp.ne.s32.totalorder %s1048_s9, %s1049_s10  ;;  %p1055_p2 = scmp.lt.s32.totalorder %s1053_s14, %s1049_s10 }
  0x1e   : > { %310 = vperm.xlu0 %1030, %v288_v5   ;;  %320 = vperm.xlu1 %1031, %v290_v6  }
  0x1f   : > { %p1051_p13 = pnand %p1050_p12, %p1182_p4  ;;  %p1056_p3 = por %p1055_p2, %p1054_p1 }
  0x20   : > { %330 = vperm.xlu2 %1032, %v292_v7   ;;  %v265_v8 = vld.sshfl [vmem:[#allocation1] sm:$0xff pattern:$0x75316420]  ;;  %v266_v9 = vld.sshfl [vmem:[#allocation1 + $0x8] sm:$0xff pattern:$0x75316420] }
  0x21   : > { %v269_v11 = vpack.c.bf16 %v265_v8, %v265_v8  ;;  %v270_v12 = vpack.c.bf16 %v266_v9, %v266_v9  ;;  %p1052_p0 = pneg %p1051_p13 }
  0x23   : > { %v450_v13 = vsel %vm448_vm0, %v269_v11, 0  ;;  %v453_v14 = vsel %vm448_vm0, %v270_v12, 0  ;;  %p1057_p5 = pnand %p1056_p3, %p1052_p0 }
  0x24   : > { %462 = vmatpush.bf16.msra.mxu0 %v450_v13  ;;  %969 = vmatpush.bf16.msra.mxu2 %v450_v13 }
  0x25   : > { %511 = vmatpush.bf16.msra.mxu1 %v453_v14  ;;  %970 = vmatpush.bf16.msra.mxu3 %v453_v14 }
  0x26   : > { %335 = vperm.xlu0 %1030, %v293_v10   ;;  %340 = vperm.xlu1 %1031, %v294_v16  }
  0x27   : > { %937 = vmatmul.msk.bf16.vlgmr.msra.gmra.mxu0 %vm423_vm1, %v960_v15  ;;  %941 = vmatmul.msk.bf16.vlgmr.msra.gmra.mxu2 %vm423_vm1, %v964_v17 }
  0x28   : > { %345 = vperm.xlu2 %1032, %v295_v18   ;;  %945 = vmatmul.msk.bf16.vlgmr.msra.gmra.mxu1 %vm423_vm1, %v960_v15 }
  0x29   : > { %949 = vmatmul.msk.bf16.vlgmr.msra.gmra.mxu3 %vm423_vm1, %v964_v17 }
  0x2e   : > { %350 = vperm.xlu0 %1030, %v296_v19   ;;  %355 = vperm.xlu1 %1031, %v297_v20  }
  0x30   : > { %360 = vperm.xlu2 %1032, %v298_v21  }
  0x36   : > { %365 = vperm.xlu0 %1030, %v299_v22   ;;  %370 = vperm.xlu1 %1031, %v300_v24  }
  0x37   : > { %938 = vmatmul.msk.bf16.gmra.mxu0 %vm423_vm1, %v961_v23  ;;  %942 = vmatmul.msk.bf16.gmra.mxu2 %vm423_vm1, %v965_v25 }
  0x38   : > { %375 = vperm.xlu2 %1032, %v301_v26   ;;  %946 = vmatmul.msk.bf16.gmra.mxu1 %vm423_vm1, %v961_v23 }
  0x39   : > { %950 = vmatmul.msk.bf16.gmra.mxu3 %vm423_vm1, %v965_v25 }
  0x3e   : > { %380 = vperm.xlu0 %1030, %v302_v27  }
  0x47   : > { %939 = vmatmul.msk.bf16.gmra.mxu0 %vm423_vm1, %v962_v28  ;;  %943 = vmatmul.msk.bf16.gmra.mxu2 %vm423_vm1, %v966_v29 }
  0x48   : > { %947 = vmatmul.msk.bf16.gmra.mxu1 %vm423_vm1, %v962_v28 }
  0x49   : > { %951 = vmatmul.msk.bf16.gmra.mxu3 %vm423_vm1, %v966_v29 }
  0x57   : > { %940 = vmatmul.msk.bf16.gmra.mxu0 %vm423_vm1, %v963_v30  ;;  %944 = vmatmul.msk.bf16.gmra.mxu2 %vm423_vm1, %v967_v31 }
  0x58   : > { %948 = vmatmul.msk.bf16.gmra.mxu1 %vm423_vm1, %v963_v30 }
  0x59   : > { %952 = vmatmul.msk.bf16.gmra.mxu3 %vm423_vm1, %v967_v31 }
  0x72   : > { %v1293_v33 = vpop.permute.xlu2 %325 }
  0x7a   : > { %v1295_v36 = vpop.permute.xlu2 %330 }
  0x82   : > { %v346_v47 = vpop.permute.xlu2 %345 }
  0x88   : > { %v306_v32 = vpop.permute.xlu0 %305  ;;  %v316_v34 = vpop.permute.xlu1 %315 }
  0x90   : > { %v311_v35 = vpop.permute.xlu0 %310  ;;  %v321_v41 = vpop.permute.xlu1 %320 }
  0x98   : > { %v1300_v44 = vpop.permute.xlu0 %335  ;;  %v1305_v60 = vpop.permute.xlu1 %340 }
  0xa0   : > { %v351_v0 = vpop.permute.xlu0 %350  ;;  %v356_v17 = vpop.permute.xlu1 %355 }
  0xa4   : > { %v464_v37 = vpop.f32.mrf.mxu0 }
  0xa5   : > { %v465_v38 = vadd.f32 %v464_v37, %v306_v32  ;;  %v513_v39 = vpop.f32.mrf.mxu1  ;;  %v361_v37 = vpop.permute.xlu2 %360 }
  0xa6   : > { %v514_v40 = vadd.f32 %v513_v39, %v306_v32 }
  0xa7   : > { %v553_v42 = vmax.f32 %v465_v38, 0.0 }
  0xa8   : > { %v554_v43 = vmax.f32 %v514_v40, 0.0 }
  0xaa   : > { %v585_v45 = vpack.c.bf16 %v554_v43, %v553_v42  ;;  %v633_v46 = vadd.f32 %v554_v43, %v553_v42  ;;  %v484_v48 = vpop.f32.mrf.mxu2 }
  0xab   : > { %v485_v49 = vadd.f32 %v484_v48, %v346_v47 }
  0xac   : > { %601 = vst [vmem:[%s1302_s13] sm:$0xff] %v585_v45  ;;  %v533_v50 = vpop.f32.mrf.mxu3  ;;  %634 = vadd.xlane.f32.xlu1 %v633_v46  ;;  %v466_v51 = vpop.f32.mrf.mxu0 }
  0xad   : > { %v534_v52 = vadd.f32 %v533_v50, %v346_v47  ;;  %v467_v53 = vadd.f32 %v466_v51, %v311_v35  ;;  %v515_v54 = vpop.f32.mrf.mxu1  ;;  %v569_v55 = vmax.f32 %v485_v49, 0.0 }
  0xae   : > { %v516_v56 = vadd.f32 %v515_v54, %v311_v35 }
  0xaf   : > { %v570_v57 = vmax.f32 %v534_v52, 0.0  ;;  %v555_v58 = vmax.f32 %v467_v53, 0.0 }
  0xb0   : > { %v556_v59 = vmax.f32 %v516_v56, 0.0 }
  0xb1   : > { %v593_v61 = vpack.c.bf16 %v570_v57, %v569_v55  ;;  %v657_v62 = vadd.f32 %v570_v57, %v569_v55  ;;  %v366_v55 = vpop.permute.xlu0 %365 }
  0xb2   : > { %v586_v63 = vpack.c.bf16 %v556_v59, %v555_v58  ;;  %v486_v1 = vpop.f32.mrf.mxu2  ;;  %v636_v15 = vadd.f32 %v556_v59, %v555_v58 }
  0xb3   : > { %609 = vst [vmem:[%s1302_s13 + $0x40] sm:$0xff] %v593_v61  ;;  %658 = vadd.xlane.f32.xlu2 %v657_v62  ;;  %v487_v2 = vadd.f32 %v486_v1, %v351_v0 }
  0xb4   : > { %602 = vst [vmem:[%s1302_s13 + $0x8] sm:$0xff] %v586_v63  ;;  %v535_v3 = vpop.f32.mrf.mxu3  ;;  %v469_v4 = vpop.f32.mrf.mxu0  ;;  %v1114_v63 = vmov 0.0  }
  0xb5   : > { %v536_v5 = vadd.f32 %v535_v3, %v351_v0  ;;  %v470_v6 = vadd.f32 %v469_v4, %v316_v34  ;;  %v518_v7 = vpop.f32.mrf.mxu1  ;;  %v571_v8 = vmax.f32 %v487_v2, 0.0  ;;  %246 = vst.msk [vmem:[%s1319_s24] sm:$0xff] %vm245_vm2, %v1114_v63 }
  0xb6   : > { %v519_v9 = vadd.f32 %v518_v7, %v316_v34  ;;  %247 = vst.msk [vmem:[%s1319_s24 + $0x8] sm:$0xff] %vm245_vm2, %v1114_v63 }
  0xb7   : > { %v572_v10 = vmax.f32 %v536_v5, 0.0  ;;  %v557_v11 = vmax.f32 %v470_v6, 0.0  ;;  %248 = vst.msk [vmem:[%s1319_s24 + $0x10] sm:$0xff] %vm245_vm2, %v1114_v63 }
  0xb8   : > { %v558_v12 = vmax.f32 %v519_v9, 0.0  ;;  %249 = vst.msk [vmem:[%s1319_s24 + $0x18] sm:$0xff] %vm245_vm2, %v1114_v63 }
  0xb9   : > { %v594_v13 = vpack.c.bf16 %v572_v10, %v571_v8  ;;  %v660_v14 = vadd.f32 %v572_v10, %v571_v8  ;;  %250 = vst.msk [vmem:[%s1319_s24 + $0x20] sm:$0xff] %vm245_vm2, %v1114_v63 }
  0xba   : > { %v587_v16 = vpack.c.bf16 %v558_v12, %v557_v11  ;;  %v489_v18 = vpop.f32.mrf.mxu2  ;;  %v639_v31 = vadd.f32 %v558_v12, %v557_v11  ;;  %251 = vst.msk [vmem:[%s1319_s24 + $0x28] sm:$0xff] %vm245_vm2, %v1114_v63 }
  0xbb   : > { %610 = vst [vmem:[%s1302_s13 + $0x48] sm:$0xff] %v594_v13  ;;  %661 = vadd.xlane.f32.xlu0 %v660_v14  ;;  %637 = vadd.xlane.f32.xlu2 %v636_v15  ;;  %v490_v19 = vadd.f32 %v489_v18, %v356_v17 }
  0xbc   : > { %603 = vst [vmem:[%s1302_s13 + $0x10] sm:$0xff] %v587_v16  ;;  %v538_v20 = vpop.f32.mrf.mxu3  ;;  %v471_v21 = vpop.f32.mrf.mxu0 }
  0xbd   : > { %v539_v22 = vadd.f32 %v538_v20, %v356_v17  ;;  %v472_v23 = vadd.f32 %v471_v21, %v321_v41  ;;  %v520_v24 = vpop.f32.mrf.mxu1  ;;  %v573_v25 = vmax.f32 %v490_v19, 0.0  ;;  %252 = vst.msk [vmem:[%s1319_s24 + $0x30] sm:$0xff] %vm245_vm2, %v1114_v63 }
  0xbe   : > { %v521_v26 = vadd.f32 %v520_v24, %v321_v41  ;;  %253 = vst.msk [vmem:[%s1319_s24 + $0x38] sm:$0xff] %vm245_vm2, %v1114_v63  ;;  %v376_v24 = vpop.permute.xlu2 %375 }
  0xbf   : > { %v574_v27 = vmax.f32 %v539_v22, 0.0  ;;  %v559_v28 = vmax.f32 %v472_v23, 0.0  ;;  %254 = vst.msk [vmem:[%s1319_s24 + $0x40] sm:$0xff] %vm245_vm2, %v1114_v63 }
  0xc0   : > { %v560_v29 = vmax.f32 %v521_v26, 0.0  ;;  %255 = vst.msk [vmem:[%s1319_s24 + $0x48] sm:$0xff] %vm245_vm2, %v1114_v63 }
  0xc1   : > { %v595_v30 = vpack.c.bf16 %v574_v27, %v573_v25  ;;  %v663_v32 = vadd.f32 %v574_v27, %v573_v25  ;;  %256 = vst.msk [vmem:[%s1319_s24 + $0x50] sm:$0xff] %vm245_vm2, %v1114_v63 }
  0xc2   : > { %v588_v34 = vpack.c.bf16 %v560_v29, %v559_v28  ;;  %v642_v35 = vadd.f32 %v560_v29, %v559_v28  ;;  %v491_v38 = vpop.f32.mrf.mxu2  ;;  %257 = vst.msk [vmem:[%s1319_s24 + $0x58] sm:$0xff] %vm245_vm2, %v1114_v63 }
  0xc3   : > { %611 = vst [vmem:[%s1302_s13 + $0x50] sm:$0xff] %v595_v30  ;;  %640 = vadd.xlane.f32.xlu0 %v639_v31  ;;  %664 = vadd.xlane.f32.xlu1 %v663_v32  ;;  %v492_v39 = vadd.f32 %v491_v38, %v361_v37 }
  0xc4   : > { %604 = vst [vmem:[%s1302_s13 + $0x18] sm:$0xff] %v588_v34  ;;  %v540_v40 = vpop.f32.mrf.mxu3  ;;  %643 = vadd.xlane.f32.xlu2 %v642_v35  ;;  %v474_v42 = vpop.f32.mrf.mxu0 }
  0xc5   : > { %v541_v41 = vadd.f32 %v540_v40, %v361_v37  ;;  %v475_v43 = vadd.f32 %v474_v42, %v1293_v33  ;;  %v523_v45 = vpop.f32.mrf.mxu1  ;;  %v575_v46 = vmax.f32 %v492_v39, 0.0  ;;  %258 = vst.msk [vmem:[%s1319_s24 + $0x60] sm:$0xff] %vm245_vm2, %v1114_v63 }
  0xc6   : > { %v524_v47 = vadd.f32 %v523_v45, %v1293_v33  ;;  %259 = vst.msk [vmem:[%s1319_s24 + $0x68] sm:$0xff] %vm245_vm2, %v1114_v63 }
  0xc7   : > { %v576_v48 = vmax.f32 %v541_v41, 0.0  ;;  %v561_v49 = vmax.f32 %v475_v43, 0.0  ;;  %260 = vst.msk [vmem:[%s1319_s24 + $0x70] sm:$0xff] %vm245_vm2, %v1114_v63  ;;  %v381_v41 = vpop.permute.xlu0 %380 }
  0xc8   : > { %v562_v50 = vmax.f32 %v524_v47, 0.0  ;;  %261 = vst.msk [vmem:[%s1319_s24 + $0x78] sm:$0xff] %vm245_vm2, %v1114_v63 }
  0xc9   : > { %v596_v51 = vpack.c.bf16 %v576_v48, %v575_v46  ;;  %v666_v53 = vadd.f32 %v576_v48, %v575_v46 }
  0xca   : > { %v589_v52 = vpack.c.bf16 %v562_v50, %v561_v49  ;;  %v645_v54 = vadd.f32 %v562_v50, %v561_v49  ;;  %v494_v56 = vpop.f32.mrf.mxu2 }
  0xcb   : > { %612 = vst [vmem:[%s1302_s13 + $0x58] sm:$0xff] %v596_v51  ;;  %v495_v33 = vadd.f32 %v494_v56, %v366_v55 }
  0xcc   : > { %605 = vst [vmem:[%s1302_s13 + $0x20] sm:$0xff] %v589_v52  ;;  %v543_v57 = vpop.f32.mrf.mxu3  ;;  %667 = vadd.xlane.f32.xlu2 %v666_v53  ;;  %646 = vadd.xlane.f32.xlu1 %v645_v54  ;;  %v476_v58 = vpop.f32.mrf.mxu0 }
  0xcd   : > { %v544_v59 = vadd.f32 %v543_v57, %v366_v55  ;;  %v477_v61 = vadd.f32 %v476_v58, %v1295_v36  ;;  %v525_v62 = vpop.f32.mrf.mxu1  ;;  %v577_v0 = vmax.f32 %v495_v33, 0.0 }
  0xce   : > { %v526_v1 = vadd.f32 %v525_v62, %v1295_v36  ;;  %v371_v36 = vpop.permute.xlu1 %370 }
  0xcf   : > { %v578_v2 = vmax.f32 %v544_v59, 0.0  ;;  %v563_v3 = vmax.f32 %v477_v61, 0.0 }
  0xd0   : > { %v564_v4 = vmax.f32 %v526_v1, 0.0 }
  0xd1   : > { %v597_v5 = vpack.c.bf16 %v578_v2, %v577_v0  ;;  %v669_v6 = vadd.f32 %v578_v2, %v577_v0 }
  0xd2   : > { %v590_v7 = vpack.c.bf16 %v564_v4, %v563_v3  ;;  %v648_v8 = vadd.f32 %v564_v4, %v563_v3  ;;  %v496_v9 = vpop.f32.mrf.mxu2 }
  0xd3   : > { %613 = vst [vmem:[%s1302_s13 + $0x60] sm:$0xff] %v597_v5  ;;  %670 = vadd.xlane.f32.xlu0 %v669_v6  ;;  %v497_v10 = vadd.f32 %v496_v9, %v371_v36 }
  0xd4   : > { %606 = vst [vmem:[%s1302_s13 + $0x28] sm:$0xff] %v590_v7  ;;  %v545_v11 = vpop.f32.mrf.mxu3  ;;  %649 = vadd.xlane.f32.xlu2 %v648_v8  ;;  %v479_v12 = vpop.f32.mrf.mxu0 }
  0xd5   : > { %v546_v13 = vadd.f32 %v545_v11, %v371_v36  ;;  %v480_v14 = vadd.f32 %v479_v12, %v1300_v44  ;;  %v528_v15 = vpop.f32.mrf.mxu1  ;;  %v579_v16 = vmax.f32 %v497_v10, 0.0 }
  0xd6   : > { %v529_v17 = vadd.f32 %v528_v15, %v1300_v44 }
  0xd7   : > { %v580_v18 = vmax.f32 %v546_v13, 0.0  ;;  %v565_v19 = vmax.f32 %v480_v14, 0.0 }
  0xd8   : > { %v566_v20 = vmax.f32 %v529_v17, 0.0 }
  0xd9   : > { %v598_v21 = vpack.c.bf16 %v580_v18, %v579_v16  ;;  %v672_v51 = vadd.f32 %v580_v18, %v579_v16 }
  0xda   : > { %v591_v22 = vpack.c.bf16 %v566_v20, %v565_v19  ;;  %v651_v23 = vadd.f32 %v566_v20, %v565_v19  ;;  %v499_v44 = vpop.f32.mrf.mxu2 }
  0xdb   : > { %614 = vst [vmem:[%s1302_s13 + $0x68] sm:$0xff] %v598_v21  ;;  %v500_v25 = vadd.f32 %v499_v44, %v376_v24 }
  0xdc   : > { %607 = vst [vmem:[%s1302_s13 + $0x30] sm:$0xff] %v591_v22  ;;  %v548_v26 = vpop.f32.mrf.mxu3  ;;  %652 = vadd.xlane.f32.xlu0 %v651_v23  ;;  %v481_v27 = vpop.f32.mrf.mxu0 }
  0xdd   : > { %v549_v28 = vadd.f32 %v548_v26, %v376_v24  ;;  %v482_v29 = vadd.f32 %v481_v27, %v1305_v60  ;;  %v530_v30 = vpop.f32.mrf.mxu1  ;;  %v581_v31 = vmax.f32 %v500_v25, 0.0 }
  0xde   : > { %v531_v32 = vadd.f32 %v530_v30, %v1305_v60 }
  0xdf   : > { %v582_v34 = vmax.f32 %v549_v28, 0.0  ;;  %v567_v35 = vmax.f32 %v482_v29, 0.0 }
  0xe0   : > { %v568_v37 = vmax.f32 %v531_v32, 0.0 }
  0xe1   : > { %v599_v38 = vpack.c.bf16 %v582_v34, %v581_v31  ;;  %v675_v39 = vadd.f32 %v582_v34, %v581_v31 }
  0xe2   : > { %v592_v40 = vpack.c.bf16 %v568_v37, %v567_v35  ;;  %v654_v42 = vadd.f32 %v568_v37, %v567_v35  ;;  %v501_v43 = vpop.f32.mrf.mxu2 }
  0xe3   : > { %615 = vst [vmem:[%s1302_s13 + $0x70] sm:$0xff] %v599_v38  ;;  %676 = vadd.xlane.f32.xlu2 %v675_v39  ;;  %v502_v60 = vadd.f32 %v501_v43, %v381_v41 }
  0xe4   : > { %608 = vst [vmem:[%s1302_s13 + $0x38] sm:$0xff] %v592_v40  ;;  %v550_v45 = vpop.f32.mrf.mxu3  ;;  %655 = vadd.xlane.f32.xlu1 %v654_v42 }
  0xe5   : > { %v551_v46 = vadd.f32 %v550_v45, %v381_v41  ;;  %v583_v47 = vmax.f32 %v502_v60, 0.0 }
  0xe7   : > { %v584_v48 = vmax.f32 %v551_v46, 0.0 }
  0xe9   : > { %v600_v49 = vpack.c.bf16 %v584_v48, %v583_v47  ;;  %v678_v50 = vadd.f32 %v584_v48, %v583_v47 }
  0xeb   : > { %616 = vst [vmem:[%s1302_s13 + $0x78] sm:$0xff] %v600_v49  ;;  %679 = vadd.xlane.f32.xlu0 %v678_v50 }
  0xec   : > { %673 = vadd.xlane.f32.xlu1 %v672_v51 }
  0xed   : > { %1060 = shalt.err (!%p1057_p5)
}
  0xee   : > { %s1115_s11 = smov 128   ;;  %s1116_s13 = smov 8   ;;  %v617_v52 = vld [vmem:[%s1319_s24] sm:$0xff]  ;;  %v626_v59 = vld [vmem:[%s1319_s24 + $0x48] sm:$0xff]  ;;  %v619_v4 = vld [vmem:[%s1319_s24 + $0x10] sm:$0xff] }
  0xef   : > { %971 = dma.vmem_to_hbm [thread:$0]  (%p1182_p4), %s786_s5, 2048, %s788_s6, %s766_s8, %s1115_s11, %s1115_s11, %s1116_s13  }
  0xf0   : > { %v625_v55 = vld [vmem:[%s1319_s24 + $0x40] sm:$0xff]  ;;  %v618_v61 = vld [vmem:[%s1319_s24 + $0x8] sm:$0xff]  ;;  %v627_v5 = vld [vmem:[%s1319_s24 + $0x50] sm:$0xff] }
  0xf1   : > { %v620_v8 = vld [vmem:[%s1319_s24 + $0x18] sm:$0xff]  ;;  %v621_v17 = vld [vmem:[%s1319_s24 + $0x20] sm:$0xff]  ;;  %v622_v28 = vld [vmem:[%s1319_s24 + $0x28] sm:$0xff] }
  0xf2   : > { %v628_v16 = vld [vmem:[%s1319_s24 + $0x58] sm:$0xff]  ;;  %v629_v26 = vld [vmem:[%s1319_s24 + $0x60] sm:$0xff]  ;;  %v623_v39 = vld [vmem:[%s1319_s24 + $0x30] sm:$0xff] }
  0xf3   : > { %v631_v46 = vld [vmem:[%s1319_s24 + $0x70] sm:$0xff]  ;;  %v624_v47 = vld [vmem:[%s1319_s24 + $0x38] sm:$0xff] }
 0x11f   : > { %v635_v53 = vpop.xlane.xlu1 %634 }
 0x120   : > { %v681_v54 = vadd.f32 %v635_v53, %v617_v52 }
 0x122   : > { %698 = vst.msk [vmem:[%s1319_s24] sm:$0xff] %vm245_vm2, %v681_v54  ;;  %v632_v54 = vld [vmem:[%s1319_s24 + $0x78] sm:$0xff] }
 0x126   : > { %v659_v56 = vpop.xlane.xlu2 %658 }
 0x127   : > { %v689_v33 = vadd.f32 %v659_v56, %v625_v55  ;;  %v630_v55 = vld [vmem:[%s1319_s24 + $0x68] sm:$0xff] }
 0x129   : > { %v717_v57 = vld [vmem:[%s1319_s24] sm:$0xff]  ;;  %706 = vst.msk [vmem:[%s1319_s24 + $0x40] sm:$0xff] %vm245_vm2, %v689_v33 }
 0x12a   : > { %v733_v58 = vmul.f32 0.00390625, %v717_v57 }
 0x12c   : > { %749 = vst.msk [vmem:[%s1319_s24] sm:$0xff] %vm245_vm2, %v733_v58 }
 0x12e   : > { %v662_v62 = vpop.xlane.xlu0 %661  ;;  %v638_v63 = vpop.xlane.xlu2 %637 }
 0x12f   : > { %v690_v0 = vadd.f32 %v662_v62, %v626_v59  ;;  %v682_v1 = vadd.f32 %v638_v63, %v618_v61 }
 0x130   : > { %v725_v2 = vld [vmem:[%s1319_s24 + $0x40] sm:$0xff] }
 0x131   : > { %v741_v3 = vmul.f32 0.00390625, %v725_v2  ;;  %707 = vst.msk [vmem:[%s1319_s24 + $0x48] sm:$0xff] %vm245_vm2, %v690_v0 }
 0x132   : > { %699 = vst.msk [vmem:[%s1319_s24 + $0x8] sm:$0xff] %vm245_vm2, %v682_v1 }
 0x133   : > { %757 = vst.msk [vmem:[%s1319_s24 + $0x40] sm:$0xff] %vm245_vm2, %v741_v3 }
 0x136   : > { %v641_v6 = vpop.xlane.xlu0 %640  ;;  %v665_v7 = vpop.xlane.xlu1 %664 }
 0x137   : > { %v683_v36 = vadd.f32 %v641_v6, %v619_v4  ;;  %v691_v9 = vadd.f32 %v665_v7, %v627_v5  ;;  %v644_v10 = vpop.xlane.xlu2 %643 }
 0x138   : > { %v726_v11 = vld [vmem:[%s1319_s24 + $0x48] sm:$0xff]  ;;  %v684_v14 = vadd.f32 %v644_v10, %v620_v8 }
 0x139   : > { %v742_v12 = vmul.f32 0.00390625, %v726_v11  ;;  %v718_v13 = vld [vmem:[%s1319_s24 + $0x8] sm:$0xff]  ;;  %700 = vst.msk [vmem:[%s1319_s24 + $0x10] sm:$0xff] %vm245_vm2, %v683_v36 }
 0x13a   : > { %v734_v15 = vmul.f32 0.00390625, %v718_v13  ;;  %708 = vst.msk [vmem:[%s1319_s24 + $0x50] sm:$0xff] %vm245_vm2, %v691_v9 }
 0x13b   : > { %758 = vst.msk [vmem:[%s1319_s24 + $0x48] sm:$0xff] %vm245_vm2, %v742_v12 }
 0x13c   : > { %750 = vst.msk [vmem:[%s1319_s24 + $0x8] sm:$0xff] %vm245_vm2, %v734_v15 }
 0x13d   : > { %701 = vst.msk [vmem:[%s1319_s24 + $0x18] sm:$0xff] %vm245_vm2, %v684_v14 }
 0x13f   : > { %v668_v18 = vpop.xlane.xlu2 %667  ;;  %v647_v19 = vpop.xlane.xlu1 %646 }
 0x140   : > { %v719_v20 = vld [vmem:[%s1319_s24 + $0x10] sm:$0xff]  ;;  %v692_v21 = vadd.f32 %v668_v18, %v628_v16  ;;  %v685_v24 = vadd.f32 %v647_v19, %v621_v17 }
 0x141   : > { %v735_v22 = vmul.f32 0.00390625, %v719_v20  ;;  %v727_v23 = vld [vmem:[%s1319_s24 + $0x50] sm:$0xff] }
 0x142   : > { %v743_v44 = vmul.f32 0.00390625, %v727_v23  ;;  %709 = vst.msk [vmem:[%s1319_s24 + $0x58] sm:$0xff] %vm245_vm2, %v692_v21 }
 0x143   : > { %751 = vst.msk [vmem:[%s1319_s24 + $0x10] sm:$0xff] %vm245_vm2, %v735_v22 }
 0x144   : > { %759 = vst.msk [vmem:[%s1319_s24 + $0x50] sm:$0xff] %vm245_vm2, %v743_v44  ;;  %v720_v25 = vld [vmem:[%s1319_s24 + $0x18] sm:$0xff] }
 0x145   : > { %v736_v27 = vmul.f32 0.00390625, %v720_v25  ;;  %702 = vst.msk [vmem:[%s1319_s24 + $0x20] sm:$0xff] %vm245_vm2, %v685_v24 }
 0x146   : > { %v671_v29 = vpop.xlane.xlu0 %670 }
 0x147   : > { %752 = vst.msk [vmem:[%s1319_s24 + $0x18] sm:$0xff] %vm245_vm2, %v736_v27  ;;  %v693_v30 = vadd.f32 %v671_v29, %v629_v26  ;;  %v650_v31 = vpop.xlane.xlu2 %649 }
 0x148   : > { %v686_v32 = vadd.f32 %v650_v31, %v622_v28 }
 0x149   : > { %v728_v34 = vld [vmem:[%s1319_s24 + $0x58] sm:$0xff]  ;;  %710 = vst.msk [vmem:[%s1319_s24 + $0x60] sm:$0xff] %vm245_vm2, %v693_v30 }
 0x14a   : > { %v744_v35 = vmul.f32 0.00390625, %v728_v34  ;;  %703 = vst.msk [vmem:[%s1319_s24 + $0x28] sm:$0xff] %vm245_vm2, %v686_v32 }
 0x14c   : > { %760 = vst.msk [vmem:[%s1319_s24 + $0x58] sm:$0xff] %vm245_vm2, %v744_v35  ;;  %v721_v37 = vld [vmem:[%s1319_s24 + $0x20] sm:$0xff] }
 0x14d   : > { %v737_v38 = vmul.f32 0.00390625, %v721_v37 }
 0x14f   : > { %753 = vst.msk [vmem:[%s1319_s24 + $0x20] sm:$0xff] %vm245_vm2, %v737_v38  ;;  %v653_v40 = vpop.xlane.xlu0 %652 }
 0x150   : > { %v729_v42 = vld [vmem:[%s1319_s24 + $0x60] sm:$0xff]  ;;  %v687_v41 = vadd.f32 %v653_v40, %v623_v39 }
 0x151   : > { %v745_v43 = vmul.f32 0.00390625, %v729_v42  ;;  %v722_v60 = vld [vmem:[%s1319_s24 + $0x28] sm:$0xff] }
 0x152   : > { %v738_v45 = vmul.f32 0.00390625, %v722_v60  ;;  %704 = vst.msk [vmem:[%s1319_s24 + $0x30] sm:$0xff] %vm245_vm2, %v687_v41 }
 0x153   : > { %761 = vst.msk [vmem:[%s1319_s24 + $0x60] sm:$0xff] %vm245_vm2, %v745_v43 }
 0x154   : > { %754 = vst.msk [vmem:[%s1319_s24 + $0x28] sm:$0xff] %vm245_vm2, %v738_v45 }
 0x156   : > { %v677_v48 = vpop.xlane.xlu2 %676 }
 0x157   : > { %v695_v49 = vadd.f32 %v677_v48, %v631_v46  ;;  %v656_v50 = vpop.xlane.xlu1 %655 }
 0x158   : > { %v688_v51 = vadd.f32 %v656_v50, %v624_v47 }
 0x159   : > { %v723_v52 = vld [vmem:[%s1319_s24 + $0x30] sm:$0xff]  ;;  %712 = vst.msk [vmem:[%s1319_s24 + $0x70] sm:$0xff] %vm245_vm2, %v695_v49 }
 0x15a   : > { %v739_v53 = vmul.f32 0.00390625, %v723_v52  ;;  %705 = vst.msk [vmem:[%s1319_s24 + $0x38] sm:$0xff] %vm245_vm2, %v688_v51 }
 0x15c   : > { %755 = vst.msk [vmem:[%s1319_s24 + $0x30] sm:$0xff] %vm245_vm2, %v739_v53 }
 0x15e   : > { %v680_v56 = vpop.xlane.xlu0 %679 }
 0x15f   : > { %v696_v33 = vadd.f32 %v680_v56, %v632_v54  ;;  %v674_v57 = vpop.xlane.xlu1 %673 }
 0x160   : > { %v731_v58 = vld [vmem:[%s1319_s24 + $0x70] sm:$0xff]  ;;  %v694_v59 = vadd.f32 %v674_v57, %v630_v55 }
 0x161   : > { %v747_v61 = vmul.f32 0.00390625, %v731_v58  ;;  %v724_v62 = vld [vmem:[%s1319_s24 + $0x38] sm:$0xff]  ;;  %713 = vst.msk [vmem:[%s1319_s24 + $0x78] sm:$0xff] %vm245_vm2, %v696_v33 }
 0x162   : > { %v740_v63 = vmul.f32 0.00390625, %v724_v62  ;;  %711 = vst.msk [vmem:[%s1319_s24 + $0x68] sm:$0xff] %vm245_vm2, %v694_v59 }
 0x163   : > { %763 = vst.msk [vmem:[%s1319_s24 + $0x70] sm:$0xff] %vm245_vm2, %v747_v61 }
 0x164   : > { %756 = vst.msk [vmem:[%s1319_s24 + $0x38] sm:$0xff] %vm245_vm2, %v740_v63 }
 0x168   : > { %v732_v0 = vld [vmem:[%s1319_s24 + $0x78] sm:$0xff] }
 0x169   : > { %v748_v1 = vmul.f32 0.00390625, %v732_v0  ;;  %v730_v2 = vld [vmem:[%s1319_s24 + $0x68] sm:$0xff] }
 0x16a   : > { %v746_v3 = vmul.f32 0.00390625, %v730_v2 }
 0x16b   : > { %764 = vst.msk [vmem:[%s1319_s24 + $0x78] sm:$0xff] %vm245_vm2, %v748_v1 }
 0x16c   : > { %762 = vst.msk [vmem:[%s1319_s24 + $0x68] sm:$0xff] %vm245_vm2, %v746_v3 }
 0x16d PF: > { %p977_p4 = scmp.ge.s32.totalorder %s1111_s20, 2  ;;  %s805_s25 = sand.u32 1, %s1091_s15  }
 0x16e   : > { %s806_s7 = scalar_lea.sflag [#allocation3], %s805_s25 }
 0x16f   : > { %p974_p6 = pnand %p977_p4, %p1189_p8 }
 0x171   : > { %p975_p7 = pneg %p974_p6 }
 0x173   : > { %1086 = dma.done.wait (%p975_p7), %s806_s7, 2048  }
 0x174   : > { %1088 = vsyncadd (%p975_p7), %s806_s7, 4294965248  ;;  %s18_s20 = sadd.s32 1, %s1111_s20   ;;  %s1510_s15 = smov %s1095_s16 }
 0x175   : > { %p15_p9 = scmp.ge.s32.totalorder %s18_s20, 4   ;;  %s1511_s16 = smov %s1099_s17 }
 0x176   : > { %s1512_s17 = smov %s1195_s28  ;;  %s1513_s18 = smov %s1107_s19 }
 0x177   : > { %s1514_s19 = smov %s1516_s23  ;;  %17 = sbr.rel (!%p15_p9) target bundleno = 4 (0x4), region = 87 }
 0x17c   :  { %820 = vsyncpa [#allocation3], 1 }
 0x17d   :  { %822 = vsyncpa [#allocation3 + $0x1], 1 }

</bundles_post_ra>
